<compile_context>
chip_gen: v7x
topology: tpu7x:2x2x1
jax: 0.10.0
libtpu: 0.0.40
codegen_flags: <defaults>
</compile_context>

<pallas_src>
import math

import jax
import jax.numpy as jnp
from jax import lax
from jax.experimental import pallas as pl
from jax.experimental.pallas import tpu as pltpu


def _linear_kernel(x_ref, w_ref, b_ref, o_ref, acc_ref):
    """One (tm, tn) output tile; reduction over the k (last) grid axis.

    x_ref: (tm, tk), w_ref: (tn, tk) [PyTorch layout], b_ref: (1, tn).
    """
    k = pl.program_id(2)

    # Init accumulator with the bias (bias folded into the reduction start).
    @pl.when(k == 0)
    def _():
        acc_ref[...] = jnp.broadcast_to(
            b_ref[...].astype(jnp.float32), acc_ref.shape
        )

    # Contract K axis of x (axis 1) with K axis of w (axis 1): X @ W^T on the MXU.
    acc_ref[...] += lax.dot_general(
        x_ref[...],
        w_ref[...],
        dimension_numbers=(((1,), (1,)), ((), ())),
        preferred_element_type=jnp.float32,
    )

    @pl.when(k == pl.num_programs(2) - 1)
    def _():
        o_ref[...] = acc_ref[...].astype(o_ref.dtype)


def _round_up(x, m):
    return ((x + m - 1) // m) * m


def _pick_tiles(M, N, K, dtype):
    """MXU-friendly tiles, capped so double-buffered tiles stay well under VMEM."""
    sub = 8 if jnp.dtype(dtype).itemsize >= 4 else 16  # sublane packing granularity
    tm = min(256, _round_up(M, sub))
    tn = min(512, _round_up(N, 128))
    tk = min(512, _round_up(K, 128))
    return tm, tn, tk


def column_linear(x, weight, bias=None, *, tm=None, tn=None, tk=None,
                  compute_dtype=None):
    """Pallas implementation of ColumnLinear.forward (F.linear semantics).

    x:      (..., in_features)
    weight: (out_features, in_features)   -- PyTorch convention, NOT transposed
    bias:   (out_features,) or None
    compute_dtype: optionally cast operands (e.g. jnp.bfloat16 on v6e/v7x);
                   accumulation stays float32, output keeps x's dtype.
    returns (..., out_features)
    """
    *lead, K = x.shape
    N, K_w = weight.shape
    assert K == K_w, f"in_features mismatch: {K} vs {K_w}"
    M = math.prod(lead) if lead else 1

    out_dtype = x.dtype
    if compute_dtype is not None:
        x = x.astype(compute_dtype)
        weight = weight.astype(compute_dtype)
    if bias is None:
        bias = jnp.zeros((N,), dtype=x.dtype)
    else:
        bias = bias.astype(x.dtype)

    dtm, dtn, dtk = _pick_tiles(M, N, K, x.dtype)
    tm = dtm if tm is None else tm
    tn = dtn if tn is None else tn
    tk = dtk if tk is None else tk

    M_pad = _round_up(M, tm)
    N_pad = _round_up(N, tn)
    K_pad = _round_up(K, tk)

    x2 = x.reshape(M, K)
    if (M_pad, K_pad) != (M, K):
        x2 = jnp.pad(x2, ((0, M_pad - M), (0, K_pad - K)))
    w2 = weight
    if (N_pad, K_pad) != (N, K):
        w2 = jnp.pad(w2, ((0, N_pad - N), (0, K_pad - K)))
    b2 = bias
    if N_pad != N:
        b2 = jnp.pad(b2, (0, N_pad - N))
    b2 = b2.reshape(1, N_pad)

    grid = (M_pad // tm, N_pad // tn, K_pad // tk)

    itemsize = jnp.dtype(x2.dtype).itemsize
    cost = pl.CostEstimate(
        flops=2 * M_pad * N_pad * K_pad,
        transcendentals=0,
        bytes_accessed=(M_pad * K_pad + N_pad * K_pad) * itemsize
        + M_pad * N_pad * jnp.dtype(out_dtype).itemsize,
    )

    out = pl.pallas_call(
        _linear_kernel,
        out_shape=jax.ShapeDtypeStruct((M_pad, N_pad), out_dtype),
        grid_spec=pltpu.PrefetchScalarGridSpec(
            num_scalar_prefetch=0,
            grid=grid,
            in_specs=[
                pl.BlockSpec((tm, tk), lambda i, j, k: (i, k)),   # x tile
                pl.BlockSpec((tn, tk), lambda i, j, k: (j, k)),   # weight tile (N,K layout)
                pl.BlockSpec((1, tn), lambda i, j, k: (0, j)),    # bias tile
            ],
            out_specs=pl.BlockSpec((tm, tn), lambda i, j, k: (i, j)),
            scratch_shapes=[pltpu.VMEM((tm, tn), jnp.float32)],
        ),
        compiler_params=pltpu.CompilerParams(
            dimension_semantics=("parallel", "parallel", "arbitrary"),
        ),
        cost_estimate=cost,
    )(x2, w2, b2)

    if (M_pad, N_pad) != (M, N):
        out = out[:M, :N]
    return out.reshape(*lead, N)


def xavier_normal(key, out_features, in_features, dtype=jnp.float32):
    """Deterministic equivalent of torch.nn.init.xavier_normal_ (gain=1)."""
    std = math.sqrt(2.0 / (in_features + out_features))
    return std * jax.random.normal(key, (out_features, in_features), dtype=dtype)


if __name__ == "__main__":
    # Shapes consistent with the module's forward: (batch, seq, hidden).
    batch, seq = 2, 8
    input_size, output_size = 128, 256

    key = jax.random.PRNGKey(0)
    k_x, k_w = jax.random.split(key)

    x = jax.random.normal(k_x, (batch, seq, input_size), dtype=jnp.float32)
    weight = xavier_normal(k_w, output_size, input_size)   # (out, in), like PyTorch
    bias = jnp.zeros((output_size,), dtype=jnp.float32)     # bias.zero_() in __init__

    linear = jax.jit(column_linear)
    y = jax.block_until_ready(linear(x, weight, bias))

    y_ref = x @ weight.T + bias
    assert y.shape == (batch, seq, output_size)
    assert jnp.allclose(y, y_ref, atol=1e-4, rtol=1e-4)

    # Second config exercises the padded (non-multiple-of-tile) path and a
    # non-zero bias to verify the bias-in-accumulator fold.
    batch2, seq2, in2, out2 = 2, 5, 100, 200
    k_x2, k_w2, k_b2 = jax.random.split(jax.random.PRNGKey(1), 3)
    x_b = jax.random.normal(k_x2, (batch2, seq2, in2), dtype=jnp.float32)
    w_b = xavier_normal(k_w2, out2, in2)
    b_b = 0.1 * jax.random.normal(k_b2, (out2,), dtype=jnp.float32)

    y_b = jax.block_until_ready(column_linear(x_b, w_b, b_b))
    y_b_ref = x_b @ w_b.T + b_b
    assert y_b.shape == (batch2, seq2, out2)
    assert jnp.allclose(y_b, y_b_ref, atol=1e-3, rtol=1e-3)

    print("KERNEL_OK")
</pallas_src>

<mosaic_0001>
module attributes {stable_mosaic.version = 11 : i64} {
  func.func @_linear_kernel(%arg0: i32, %arg1: i32, %arg2: i32, %arg3: memref<16x128xf32, #tpu.memory_space<vmem>>, %arg4: memref<256x128xf32, #tpu.memory_space<vmem>>, %arg5: memref<1x256xf32, #tpu.memory_space<vmem>>, %arg6: memref<16x256xf32, #tpu.memory_space<vmem>>, %arg7: memref<16x256xf32, #tpu.memory_space<vmem>>) attributes {dimension_semantics = [#tpu.dimension_semantics<parallel>, #tpu.dimension_semantics<parallel>, #tpu.dimension_semantics<arbitrary>], iteration_bounds = array<i64: 1, 1, 1>, scalar_prefetch = 0 : i64, scratch_operands = 1 : i64, tpu.core_type = #tpu.core_type<tc>, window_params = [{transform_indices = @transform_0, window_bounds = array<i64: 16, 128>}, {transform_indices = @transform_1, window_bounds = array<i64: 256, 128>}, {transform_indices = @transform_2, window_bounds = array<i64: 1, 256>}, {transform_indices = @transform_3, window_bounds = array<i64: 16, 256>}]} {
    %c0_i32 = arith.constant 0 : i32
    %0 = arith.cmpi eq, %arg2, %c0_i32 : i32
    %1 = arith.extui %0 : i1 to i32
    %c0_i32_0 = arith.constant 0 : i32
    %2 = arith.cmpi ne, %1, %c0_i32_0 : i32
    scf.if %2 {
      %c0_10 = arith.constant 0 : index
      %c0_11 = arith.constant 0 : index
      %12 = vector.load %arg5[%c0_10, %c0_11] : memref<1x256xf32, #tpu.memory_space<vmem>>, vector<1x256xf32>
      %13 = vector.shape_cast %12 : vector<1x256xf32> to vector<1x256xf32>
      %14 = vector.broadcast %13 : vector<1x256xf32> to vector<16x256xf32>
      %c0_12 = arith.constant 0 : index
      %c0_13 = arith.constant 0 : index
      %15 = vector.load %arg7[%c0_12, %c0_13] : memref<16x256xf32, #tpu.memory_space<vmem>>, vector<16x256xf32>
      tpu.vector_store %arg7[%c0_12, %c0_13], %14 {strides = array<i32>} : memref<16x256xf32, #tpu.memory_space<vmem>>, vector<16x256xf32>,
    } else {
    }
    %c0 = arith.constant 0 : index
    %c0_1 = arith.constant 0 : index
    %3 = vector.load %arg7[%c0, %c0_1] : memref<16x256xf32, #tpu.memory_space<vmem>>, vector<16x256xf32>
    %c0_2 = arith.constant 0 : index
    %c0_3 = arith.constant 0 : index
    %4 = vector.load %arg3[%c0_2, %c0_3] : memref<16x128xf32, #tpu.memory_space<vmem>>, vector<16x128xf32>
    %c0_4 = arith.constant 0 : index
    %c0_5 = arith.constant 0 : index
    %5 = vector.load %arg4[%c0_4, %c0_5] : memref<256x128xf32, #tpu.memory_space<vmem>>, vector<256x128xf32>
    %cst = arith.constant dense<0.000000e+00> : vector<16x256xf32>
    %6 = tpu.matmul %4, %5, %cst {dimension_numbers = #tpu.dot_dimension_numbers<[1], [1], [0], [0], [0, 0, 1, 0], [], []>} : vector<16x128xf32>, vector<256x128xf32>, vector<16x256xf32> -> vector<16x256xf32>
    %7 = arith.addf %3, %6 : vector<16x256xf32>
    %c0_6 = arith.constant 0 : index
    %c0_7 = arith.constant 0 : index
    %8 = vector.load %arg7[%c0_6, %c0_7] : memref<16x256xf32, #tpu.memory_space<vmem>>, vector<16x256xf32>
    tpu.vector_store %arg7[%c0_6, %c0_7], %7 {strides = array<i32>} : memref<16x256xf32, #tpu.memory_space<vmem>>, vector<16x256xf32>,
    %c0_i32_8 = arith.constant 0 : i32
    %9 = arith.cmpi eq, %arg2, %c0_i32_8 : i32
    %10 = arith.extui %9 : i1 to i32
    %c0_i32_9 = arith.constant 0 : i32
    %11 = arith.cmpi ne, %10, %c0_i32_9 : i32
    scf.if %11 {
      %c0_10 = arith.constant 0 : index
      %c0_11 = arith.constant 0 : index
      %12 = vector.load %arg7[%c0_10, %c0_11] : memref<16x256xf32, #tpu.memory_space<vmem>>, vector<16x256xf32>
      %c0_12 = arith.constant 0 : index
      %c0_13 = arith.constant 0 : index
      %13 = vector.load %arg6[%c0_12, %c0_13] : memref<16x256xf32, #tpu.memory_space<vmem>>, vector<16x256xf32>
      tpu.vector_store %arg6[%c0_12, %c0_13], %12 {strides = array<i32>} : memref<16x256xf32, #tpu.memory_space<vmem>>, vector<16x256xf32>,
    } else {
    }
    return
  }
  func.func @transform_0(%arg0: i32, %arg1: i32, %arg2: i32) -> (i32, i32) {
    %c0_i32 = arith.constant 0 : i32
    return %arg0, %arg2 : i32, i32
  }
  func.func @transform_1(%arg0: i32, %arg1: i32, %arg2: i32) -> (i32, i32) {
    %c0_i32 = arith.constant 0 : i32
    return %arg1, %arg2 : i32, i32
  }
  func.func @transform_2(%arg0: i32, %arg1: i32, %arg2: i32) -> (i32, i32) {
    %c0_i32 = arith.constant 0 : i32
    %c0_i32_0 = arith.constant 0 : i32
    return %c0_i32, %arg1 : i32, i32
  }
  func.func @transform_3(%arg0: i32, %arg1: i32, %arg2: i32) -> (i32, i32) {
    %c0_i32 = arith.constant 0 : i32
    return %arg0, %arg1 : i32, i32
  }
}

</mosaic_0001>

<bundles_post_ra>
// kernel: column_linear.1
= control target key start
LH: loop header
LB: loop body
LE: loop exit
PB: predicated region body
PF: predicated region fallthrough
CT: control target
= control target key end

     0   :  { %8 = vsyncpa [#allocation4], 0  ;;  %s444_s0 = inlined_call_operand.hbm [shape: f32[16,128], index: 0, kind: input, shape index: {}]   ;;  %s445_s1 = inlined_call_operand.hbm [shape: f32[256,128], index: 1, kind: input, shape index: {}]   ;;  %s446_s2 = inlined_call_operand.vmem [shape: f32[1,256], index: 2, kind: input, shape index: {}]   ;;  %s447_s3 = inlined_call_operand.hbm [shape: f32[16,256], index: 3, kind: output, shape index: {}]  }
   0x1   :  { %9 = vsyncpa [#allocation7], 0 }
   0x2   :  { %10 = vsyncpa [#allocation5], 0  ;;  %s378_s12 = smov [#allocation3]   ;;  %s306_s16 = scalar_lea.hbm %s444_s0, 256 }
   0x3   :  { %s16_s13 = sshll.u32 %s378_s12, 4  ;;  %p307_p0 = scmp.ne.s32.totalorder %s444_s0, %s306_s16  ;;  %s17_s13 = int_to_ptr.vmem [resolvable:$true] %s16_s13 }
   0x4   :  { %p310_p1 = scmp.lt.u32.totalorder %s306_s16, %s444_s0 }
   0x6   :  { %p312_p2 = pnand %p310_p1, %p307_p0 }
   0x8   :  { %315 = shalt.err (!%p312_p2)
}
   0x9   :  { %s316_s21 = scalar_lea.vmem %s17_s13, 256  ;;  %p321_p4 = scmp.lt.s32.totalorder %s17_s13, %s17_s13 }
   0xa   :  { %p317_p3 = scmp.ne.s32.totalorder %s17_s13, %s316_s21  ;;  %p322_p5 = scmp.lt.s32.totalorder %s316_s21, %s316_s21 }
   0xc   :  { %p323_p6 = por %p322_p5, %p321_p4 }
   0xe   :  { %p324_p7 = pnand %p323_p6, %p317_p3 }
  0x10   :  { %327 = shalt.err (!%p324_p7)
}
  0x11   :  { %s379_s22 = smov 128   ;;  %s380_s23 = smov 8  }
  0x12   :  { %22 = dma.hbm_to_vmem [thread:$0]  %s444_s0, 256, %s17_s13, [#allocation4], %s379_s22, %s379_s22, %s380_s23  }
  0x13   :  { %s381_s26 = smov [#allocation6]   ;;  %s328_s30 = scalar_lea.hbm %s445_s1, 4096 }
  0x14   :  { %s28_s27 = sshll.u32 %s381_s26, 4  ;;  %p329_p8 = scmp.ne.s32.totalorder %s445_s1, %s328_s30  ;;  %s29_s27 = int_to_ptr.vmem [resolvable:$true] %s28_s27 }
  0x15   :  { %p332_p9 = scmp.lt.u32.totalorder %s328_s30, %s445_s1 }
  0x17   :  { %p334_p10 = pnand %p332_p9, %p329_p8 }
  0x19   :  { %337 = shalt.err (!%p334_p10)
}
  0x1a   :  { %s338_s8 = scalar_lea.vmem %s29_s27, 4096  ;;  %p343_p12 = scmp.lt.s32.totalorder %s29_s27, %s29_s27 }
  0x1b   :  { %p339_p11 = scmp.ne.s32.totalorder %s29_s27, %s338_s8  ;;  %p344_p13 = scmp.lt.s32.totalorder %s338_s8, %s338_s8 }
  0x1d   :  { %p345_p0 = por %p344_p13, %p343_p12 }
  0x1f   :  { %p346_p1 = pnand %p345_p0, %p339_p11 }
  0x21   :  { %349 = shalt.err (!%p346_p1)
}
  0x22   :  { %34 = dma.hbm_to_vmem [thread:$0]  %s445_s1, 4096, %s29_s27, [#allocation7], %s379_s22, %s379_s22, %s380_s23  }
  0x23   :  { %372 = dma.done.wait [#allocation4], 256  }
  0x24   :  { %373 = vsyncadd [#allocation4], 4294967040 }
  0x25   :  { %374 = dma.done.wait [#allocation7], 4096  }
  0x26   :  { %375 = vsyncadd [#allocation7], 4294963200  ;;  %v85_v0 = vld [vmem:[#allocation6 + $0x80] sm:$0xff]  ;;  %v86_v1 = vld [vmem:[#allocation6 + $0x88] sm:$0xff]  ;;  %v49_v50 = vlaneseq  ;;  %s382_s11 = smov [#allocation8]  }
  0x27   :  { %v69_v2 = vld [vmem:[#allocation6] sm:$0xff]  ;;  %v251_v3 = vpack.c.bf16 %v86_v1, %v85_v0  ;;  %v70_v4 = vld [vmem:[#allocation6 + $0x8] sm:$0xff]  ;;  %v87_v5 = vld [vmem:[#allocation6 + $0x90] sm:$0xff]  ;;  %s202_s12 = sshll.u32 %s382_s11, 4  ;;  %s203_s12 = int_to_ptr.vmem [resolvable:$true] %s202_s12 }
  0x28   :  { %v88_v6 = vld [vmem:[#allocation6 + $0x98] sm:$0xff]  ;;  %v253_v7 = vpack.c.bf16 %v70_v4, %v69_v2  ;;  %v71_v9 = vld [vmem:[#allocation6 + $0x10] sm:$0xff]  ;;  %v89_v11 = vld [vmem:[#allocation6 + $0xa0] sm:$0xff]  ;;  %v50_v51 = vshrl.u32 %v49_v50, 7  ;;  %s350_s13 = scalar_lea.vmem %s203_s12, 512  ;;  %p355_p3 = scmp.lt.s32.totalorder %s203_s12, %s203_s12 }
  0x29   :  { %v255_v8 = vpack.c.bf16 %v88_v6, %v87_v5  ;;  %252 = vmatprep.subr.bf16.mxu0 %v251_v3  ;;  %283 = vmatprep.subr.bf16.mxu1 %v251_v3  ;;  %v72_v10 = vld [vmem:[#allocation6 + $0x18] sm:$0xff]  ;;  %v90_v12 = vld [vmem:[#allocation6 + $0xa8] sm:$0xff]  ;;  %v67_v15 = vld [vmem:[#allocation3] sm:$0xff]  ;;  %p351_p2 = scmp.ne.s32.totalorder %s203_s12, %s350_s13  ;;  %p356_p4 = scmp.lt.s32.totalorder %s350_s13, %s350_s13 }
  0x2a   :  { %254 = vmatpush3.bf16.xpose.msra.mxu0 %v253_v7  ;;  %291 = vmatpush3.bf16.xpose.msra.mxu1 %v253_v7  ;;  %v257_v13 = vpack.c.bf16 %v72_v10, %v71_v9  ;;  %v259_v14 = vpack.c.bf16 %v90_v12, %v89_v11  ;;  %v68_v16 = vld [vmem:[#allocation3 + $0x8] sm:$0xff]  ;;  %v73_v17 = vld [vmem:[#allocation6 + $0x20] sm:$0xff]  ;;  %v74_v18 = vld [vmem:[#allocation6 + $0x28] sm:$0xff]  ;;  %v51_v52 = vsub.s32 0, %v50_v51  ;;  %v55_v54 = vsub.s32 1, %v50_v51 }
  0x2b   :  { %256 = vmatprep.subr.bf16.mxu0 %v255_v8  ;;  %284 = vmatprep.subr.bf16.mxu1 %v255_v8  ;;  %v91_v19 = vld [vmem:[#allocation6 + $0xb0] sm:$0xff]  ;;  %v92_v20 = vld [vmem:[#allocation6 + $0xb8] sm:$0xff]  ;;  %v261_v21 = vpack.c.bf16 %v74_v18, %v73_v17  ;;  %v93_v25 = vld [vmem:[#allocation6 + $0xc0] sm:$0xff]  ;;  %p357_p5 = por %p356_p4, %p355_p3 }
  0x2c   :  { %247 = vmatprep.mubr.f32.mxu0 %v67_v15  ;;  %249 = vmatprep.mubr.f32.mxu1 %v68_v16  ;;  %v263_v22 = vpack.c.bf16 %v92_v20, %v91_v19  ;;  %v75_v23 = vld [vmem:[#allocation6 + $0x30] sm:$0xff]  ;;  %v76_v24 = vld [vmem:[#allocation6 + $0x38] sm:$0xff]  ;;  %v94_v26 = vld [vmem:[#allocation6 + $0xc8] sm:$0xff] }
  0x2d   :  { %v265_v27 = vpack.c.bf16 %v76_v24, %v75_v23  ;;  %v267_v28 = vpack.c.bf16 %v94_v26, %v93_v25  ;;  %v77_v29 = vld [vmem:[#allocation6 + $0x40] sm:$0xff]  ;;  %v78_v30 = vld [vmem:[#allocation6 + $0x48] sm:$0xff]  ;;  %v95_v31 = vld [vmem:[#allocation6 + $0xd0] sm:$0xff]  ;;  %p358_p6 = pnand %p357_p5, %p351_p2 }
  0x2e   :  { %v96_v32 = vld [vmem:[#allocation6 + $0xd8] sm:$0xff]  ;;  %v269_v33 = vpack.c.bf16 %v78_v30, %v77_v29  ;;  %v79_v35 = vld [vmem:[#allocation6 + $0x50] sm:$0xff]  ;;  %v97_v37 = vld [vmem:[#allocation6 + $0xe0] sm:$0xff] }
  0x2f   :  { %v271_v34 = vpack.c.bf16 %v96_v32, %v95_v31  ;;  %v80_v36 = vld [vmem:[#allocation6 + $0x58] sm:$0xff]  ;;  %v98_v38 = vld [vmem:[#allocation6 + $0xe8] sm:$0xff]  ;;  %v81_v41 = vld [vmem:[#allocation6 + $0x60] sm:$0xff] }
  0x30   :  { %v273_v39 = vpack.c.bf16 %v80_v36, %v79_v35  ;;  %v275_v40 = vpack.c.bf16 %v98_v38, %v97_v37  ;;  %v82_v42 = vld [vmem:[#allocation6 + $0x68] sm:$0xff]  ;;  %v99_v43 = vld [vmem:[#allocation6 + $0xf0] sm:$0xff]  ;;  %v100_v44 = vld [vmem:[#allocation6 + $0xf8] sm:$0xff] }
  0x31   :  { %v277_v45 = vpack.c.bf16 %v82_v42, %v81_v41  ;;  %v279_v46 = vpack.c.bf16 %v100_v44, %v99_v43  ;;  %v83_v47 = vld [vmem:[#allocation6 + $0x70] sm:$0xff]  ;;  %v84_v48 = vld [vmem:[#allocation6 + $0x78] sm:$0xff] }
  0x32   :  { %258 = vmatpush3.bf16.xpose.msra.mxu0 %v257_v13  ;;  %292 = vmatpush3.bf16.xpose.msra.mxu1 %v257_v13  ;;  %v281_v49 = vpack.c.bf16 %v84_v48, %v83_v47  ;;  %v47_v53 = vld [vmem:[%s446_s2] sm:$0x3] }
  0x33   :  { %260 = vmatprep.subr.bf16.mxu0 %v259_v14  ;;  %285 = vmatprep.subr.bf16.mxu1 %v259_v14  ;;  %v52_v55 = vrot.slane %v47_v53, %v51_v52  ;;  %v56_v56 = vrot.slane %v47_v53, %v55_v54 }
  0x3a   :  { %262 = vmatpush3.bf16.xpose.msra.mxu0 %v261_v21  ;;  %293 = vmatpush3.bf16.xpose.msra.mxu1 %v261_v21 }
  0x3b   :  { %264 = vmatprep.subr.bf16.mxu0 %v263_v22  ;;  %286 = vmatprep.subr.bf16.mxu1 %v263_v22 }
  0x42   :  { %266 = vmatpush3.bf16.xpose.msra.mxu0 %v265_v27  ;;  %294 = vmatpush3.bf16.xpose.msra.mxu1 %v265_v27 }
  0x43   :  { %268 = vmatprep.subr.bf16.mxu0 %v267_v28  ;;  %287 = vmatprep.subr.bf16.mxu1 %v267_v28 }
  0x4a   :  { %270 = vmatpush3.bf16.xpose.msra.mxu0 %v269_v33  ;;  %295 = vmatpush3.bf16.xpose.msra.mxu1 %v269_v33 }
  0x4b   :  { %272 = vmatprep.subr.bf16.mxu0 %v271_v34  ;;  %288 = vmatprep.subr.bf16.mxu1 %v271_v34 }
  0x52   :  { %274 = vmatpush3.bf16.xpose.msra.mxu0 %v273_v39  ;;  %296 = vmatpush3.bf16.xpose.msra.mxu1 %v273_v39 }
  0x53   :  { %276 = vmatprep.subr.bf16.mxu0 %v275_v40  ;;  %289 = vmatprep.subr.bf16.mxu1 %v275_v40 }
  0x5a   :  { %278 = vmatpush3.bf16.xpose.msra.mxu0 %v277_v45  ;;  %297 = vmatpush3.bf16.xpose.msra.mxu1 %v277_v45 }
  0x5b   :  { %280 = vmatprep.subr.bf16.mxu0 %v279_v46  ;;  %290 = vmatprep.subr.bf16.mxu1 %v279_v46 }
  0x62   :  { %282 = vmatpush3.bf16.xpose.msra.mxu0 %v281_v49  ;;  %298 = vmatpush3.bf16.xpose.msra.mxu1 %v281_v49 }
  0x69   :  { %248 = vmatmul.mubr.f32.vlgmr.msra.gmra.mrb[0].mxu0 %v67_v15  ;;  %250 = vmatmul.mubr.f32.vlgmr.msra.gmra.mrb[0].mxu1 %v68_v16 }
 0x13c   :  { %v167_v57 = vpop.f32.mrb[0].mxu0  ;;  %v173_v58 = vpop.f32.mrb[0].mxu1 }
 0x13d   :  { %v178_v59 = vadd.f32 %v167_v57, %v52_v55  ;;  %v180_v60 = vadd.f32 %v173_v58, %v52_v55  ;;  %v169_v61 = vpop.f32.mrb[1].mxu0  ;;  %v175_v62 = vpop.f32.mrb[1].mxu1 }
 0x13e   :  { %v179_v63 = vadd.f32 %v169_v61, %v56_v56  ;;  %v181_v0 = vadd.f32 %v175_v62, %v56_v56 }
 0x13f   :  { %193 = vst [vmem:[#allocation8] sm:$0xff] %v178_v59  ;;  %195 = vst [vmem:[#allocation8 + $0x10] sm:$0xff] %v180_v60 }
 0x140   :  { %194 = vst [vmem:[#allocation8 + $0x8] sm:$0xff] %v179_v63  ;;  %196 = vst [vmem:[#allocation8 + $0x18] sm:$0xff] %v181_v0 }
 0x141   :  { %361 = shalt.err (!%p358_p6)
}
 0x142   :  { %s362_s15 = scalar_lea.hbm %s447_s3, 512 }
 0x143   :  { %p363_p7 = scmp.ne.s32.totalorder %s447_s3, %s362_s15  ;;  %p366_p8 = scmp.lt.u32.totalorder %s362_s15, %s447_s3 }
 0x145   :  { %p368_p9 = pnand %p366_p8, %p363_p7 }
 0x147   :  { %371 = shalt.err (!%p368_p9)
}
 0x148   :  { %s383_s20 = smov 256   ;;  %s384_s21 = smov 16  }
 0x149   :  { %208 = dma.vmem_to_hbm [thread:$0]  %s203_s12, 512, %s447_s3, [#allocation5], %s383_s20, %s383_s20, %s384_s21  }
 0x14a   :  { %376 = dma.done.wait [#allocation5], 512  }
 0x14b   :  { %377 = vsyncadd [#allocation5], 4294966784 }
 0x14c   :  { %212 = vsyncpa [#allocation4], 1 }
 0x14d   :  { %213 = vsyncpa [#allocation7], 1 }
 0x14e   :  { %214 = vsyncpa [#allocation5], 1 }

</bundles_post_ra>
